<compile_context>
chip_gen: v6e
topology: v6e:2x2x1
jax: 0.10.0
libtpu: 0.0.40
codegen_flags: <defaults>
</compile_context>

<pallas_src>
import functools

import jax
import jax.numpy as jnp
import numpy as np
from jax import lax
from jax.experimental import pallas as pl
from jax.experimental.pallas import tpu as pltpu


def _stnm_kernel(gxy_ref, imgmsk_ref, canvas_ref, out_ref, *, Hin, Win, C, mm_dtype):
    """One grid step == (batch element, output-pixel tile)."""
    g = gxy_ref[0].astype(jnp.float32)      # (2, TP) normalized coords in [-1, 1]
    x = g[0:1, :]                           # (1, TP)
    y = g[1:2, :]                           # (1, TP)
    TP = x.shape[-1]

    # Unnormalize (align_corners=False, PyTorch default).
    ix = ((x + 1.0) * Win - 1.0) * 0.5
    iy = ((y + 1.0) * Hin - 1.0) * 0.5

    ix0f = jnp.floor(ix)
    iy0f = jnp.floor(iy)
    wx1 = ix - ix0f
    wx0 = 1.0 - wx1
    wy1 = iy - iy0f
    wy0 = 1.0 - wy1

    ix0 = ix0f.astype(jnp.int32)
    iy0 = iy0f.astype(jnp.int32)
    ix1 = ix0 + 1
    iy1 = iy0 + 1

    # Factorized (separable) sampling matrices.  Zeros padding falls out for free:
    # out-of-range corner indices never match any iota row, so they contribute 0.
    y_iota = lax.broadcasted_iota(jnp.int32, (Hin, TP), 0)
    x_iota = lax.broadcasted_iota(jnp.int32, (Win, TP), 0)
    Ry = jnp.where(y_iota == iy0, wy0, jnp.where(y_iota == iy1, wy1, 0.0))  # (Hin, TP)
    Cx = jnp.where(x_iota == ix0, wx0, jnp.where(x_iota == ix1, wx1, 0.0))  # (Win, TP)
    M = (Ry[:, None, :] * Cx[None, :, :]).reshape(Hin * Win, TP)            # (HW, TP)

    # Single MXU matmul samples the image channels and the mask together.
    imgmsk = imgmsk_ref[0]                                                  # (C+1, HW)
    sampled = jnp.dot(imgmsk.astype(mm_dtype), M.astype(mm_dtype),
                      preferred_element_type=jnp.float32)                   # (C+1, TP)
    fg_s = sampled[:C]          # (C, TP)  = grid_sample(fgimg)
    m_s = sampled[C:C + 1]      # (1, TP)  = grid_sample(fgmask)

    cvs = canvas_ref[0].astype(jnp.float32)                                 # (C, TP)
    out_ref[0] = (m_s * fg_s + (1.0 - m_s) * cvs).astype(out_ref.dtype)


def _choose_tile(P, max_tile):
    """Largest output-pixel tile <= max_tile that divides P and is a multiple of 128."""
    if P <= max_tile:
        return P
    start = max_tile - (max_tile % 128)
    for tp in range(start, 0, -128):
        if P % tp == 0:
            return tp
    return P  # fallback: no tiling (P not 128-divisible)


def stnm(canvas, fgimg, fggrid, fgmask, *, max_tile=1024, use_bf16_matmul=False):
    """canvas: (N,C,Ho,Wo), fgimg: (N,C,Hin,Win), fggrid: (N,Ho,Wo,2), fgmask: (N,1,Hin,Win)."""
    N, C, Ho, Wo = canvas.shape
    Nf, Cf, Hin, Win = fgimg.shape
    assert Nf == N and Cf == C
    assert fggrid.shape == (N, Ho, Wo, 2)
    assert fgmask.shape == (N, 1, Hin, Win)

    P = Ho * Wo
    HW = Hin * Win
    TP = _choose_tile(P, max_tile)
    n_tiles = P // TP

    # Fuse the mask as one extra channel so a single matmul samples both.
    # No wrapper upcast: the source dtype is DMA'd; upcasts happen in-kernel.
    imgmsk = jnp.concatenate(
        [fgimg.reshape(N, C, HW), fgmask.reshape(N, 1, HW).astype(fgimg.dtype)], axis=1)
    cvs = canvas.reshape(N, C, P)
    gxy = jnp.transpose(fggrid.reshape(N, P, 2), (0, 2, 1))   # (N, 2, P): row 0 = x, row 1 = y

    mm_dtype = jnp.bfloat16 if use_bf16_matmul else jnp.float32
    kern = functools.partial(_stnm_kernel, Hin=Hin, Win=Win, C=C, mm_dtype=mm_dtype)

    # Scoped VMEM sized to the M tile + resident image block + double-buffered
    # streaming blocks, with headroom, clamped to v7x physical VMEM (64 MiB).
    isz = jnp.dtype(imgmsk.dtype).itemsize
    csz = jnp.dtype(canvas.dtype).itemsize
    gsz = jnp.dtype(fggrid.dtype).itemsize
    vmem_needed = (4 * (HW + Hin + Win) * TP          # M, Ry, Cx (f32)
                   + 2 * (C + 1) * HW * isz           # resident image+mask block
                   + 2 * 2 * TP * gsz                 # gxy    (double-buffered)
                   + 2 * C * TP * csz                 # canvas (double-buffered)
                   + 2 * C * TP * csz                 # out    (double-buffered)
                   + (4 << 20))                       # headroom
    vmem_limit = int(min(max(vmem_needed, 32 << 20), 64 << 20))

    out = pl.pallas_call(
        kern,
        out_shape=jax.ShapeDtypeStruct((N, C, P), canvas.dtype),
        grid=(N, n_tiles),
        in_specs=[
            pl.BlockSpec((1, 2, TP), lambda n, t: (n, 0, t)),       # grid x/y coords
            pl.BlockSpec((1, C + 1, HW), lambda n, t: (n, 0, 0)),   # fgimg+fgmask (resident across t)
            pl.BlockSpec((1, C, TP), lambda n, t: (n, 0, t)),       # canvas
        ],
        out_specs=pl.BlockSpec((1, C, TP), lambda n, t: (n, 0, t)),
        compiler_params=pltpu.CompilerParams(
            dimension_semantics=("parallel", "parallel"),
            vmem_limit_bytes=vmem_limit),
    )(gxy, imgmsk, cvs)

    return out.reshape(N, C, Ho, Wo)


# ---------------- numpy reference (mirrors F.grid_sample defaults) ----------------
def _grid_sample_ref(inp, grid):
    inp = np.asarray(inp, np.float32)
    grid = np.asarray(grid, np.float32)
    N, C, H, W = inp.shape
    x = grid[..., 0]
    y = grid[..., 1]
    ix = ((x + 1.0) * W - 1.0) / 2.0
    iy = ((y + 1.0) * H - 1.0) / 2.0
    ix0 = np.floor(ix).astype(np.int64)
    iy0 = np.floor(iy).astype(np.int64)
    ix1 = ix0 + 1
    iy1 = iy0 + 1
    wx1 = ix - ix0
    wx0 = 1.0 - wx1
    wy1 = iy - iy0
    wy0 = 1.0 - wy1

    n_idx = np.arange(N)[:, None, None]

    def gather(iy_, ix_):
        valid = (ix_ >= 0) & (ix_ < W) & (iy_ >= 0) & (iy_ < H)
        ixc = np.clip(ix_, 0, W - 1)
        iyc = np.clip(iy_, 0, H - 1)
        v = inp[n_idx, :, iyc, ixc]              # (N, Ho, Wo, C)
        v = np.transpose(v, (0, 3, 1, 2))        # (N, C, Ho, Wo)
        return v * valid[:, None, :, :]

    out = (gather(iy0, ix0) * (wy0 * wx0)[:, None]
           + gather(iy0, ix1) * (wy0 * wx1)[:, None]
           + gather(iy1, ix0) * (wy1 * wx0)[:, None]
           + gather(iy1, ix1) * (wy1 * wx1)[:, None])
    return out


def _stnm_ref(canvas, fgimg, fggrid, fgmask):
    mask = _grid_sample_ref(fgmask, fggrid)
    fg = _grid_sample_ref(fgimg, fggrid)
    return mask * fg + (1.0 - mask) * np.asarray(canvas, np.float32)


def _run_case(key, N, C, Hin, Win, Ho, Wo, max_tile):
    k1, k2, k3, k4 = jax.random.split(key, 4)
    canvas = jax.random.uniform(k1, (N, C, Ho, Wo), jnp.float32)
    fgimg = jax.random.uniform(k2, (N, C, Hin, Win), jnp.float32)
    # grid slightly outside [-1, 1] to exercise zeros padding
    fggrid = jax.random.uniform(k3, (N, Ho, Wo, 2), jnp.float32, minval=-1.1, maxval=1.1)
    fgmask = jax.nn.sigmoid(jax.random.normal(k4, (N, 1, Hin, Win), jnp.float32))

    out = stnm(canvas, fgimg, fggrid, fgmask, max_tile=max_tile)
    out = jax.block_until_ready(out)

    ref = _stnm_ref(np.asarray(canvas), np.asarray(fgimg),
                    np.asarray(fggrid), np.asarray(fgmask))
    np.testing.assert_allclose(np.asarray(out), ref, rtol=1e-5, atol=1e-5)


if __name__ == "__main__":
    key = jax.random.PRNGKey(0)
    kA, kB = jax.random.split(key)

    # Case 1: small square shapes consistent with the module's forward (single P tile).
    _run_case(kA, N=2, C=4, Hin=16, Win=16, Ho=16, Wo=16, max_tile=1024)

    # Case 2: different input/output resolution, exercises the tiled-P path (2 tiles).
    _run_case(kB, N=1, C=3, Hin=8, Win=8, Ho=32, Wo=32, max_tile=512)

    print("KERNEL_OK")
</pallas_src>

<mosaic_0001>
module attributes {stable_mosaic.version = 11 : i64} {
  func.func @_stnm_kernel(%arg0: i32, %arg1: i32, %arg2: memref<1x2x256xf32, #tpu.memory_space<vmem>>, %arg3: memref<1x5x256xf32, #tpu.memory_space<vmem>>, %arg4: memref<1x4x256xf32, #tpu.memory_space<vmem>>, %arg5: memref<1x4x256xf32, #tpu.memory_space<vmem>>) attributes {dimension_semantics = [#tpu.dimension_semantics<parallel>, #tpu.dimension_semantics<parallel>], iteration_bounds = array<i64: 2, 1>, scalar_prefetch = 0 : i64, scratch_operands = 0 : i64, tpu.core_type = #tpu.core_type<tc>, window_params = [{transform_indices = @transform_0, window_bounds = array<i64: 1, 2, 256>}, {transform_indices = @transform_1, window_bounds = array<i64: 1, 5, 256>}, {transform_indices = @transform_2, window_bounds = array<i64: 1, 4, 256>}, {transform_indices = @transform_3, window_bounds = array<i64: 1, 4, 256>}]} {
    %c0 = arith.constant 0 : index
    %c0_0 = arith.constant 0 : index
    %c0_1 = arith.constant 0 : index
    %0 = vector.load %arg2[%c0, %c0_0, %c0_1] : memref<1x2x256xf32, #tpu.memory_space<vmem>>, vector<1x2x256xf32>
    %1 = vector.shape_cast %0 : vector<1x2x256xf32> to vector<2x256xf32>
    %2 = vector.extract_strided_slice %1 {offsets = [0, 0], sizes = [1, 256], strides = [1, 1]} : vector<2x256xf32> to vector<1x256xf32>
    %3 = vector.extract_strided_slice %1 {offsets = [1, 0], sizes = [1, 256], strides = [1, 1]} : vector<2x256xf32> to vector<1x256xf32>
    %cst = arith.constant 1.000000e+00 : f32
    %4 = vector.broadcast %cst : f32 to vector<1x256xf32>
    %5 = arith.addf %2, %4 : vector<1x256xf32>
    %cst_2 = arith.constant 1.600000e+01 : f32
    %6 = vector.broadcast %cst_2 : f32 to vector<1x256xf32>
    %7 = arith.mulf %5, %6 : vector<1x256xf32>
    %cst_3 = arith.constant 1.000000e+00 : f32
    %8 = vector.broadcast %cst_3 : f32 to vector<1x256xf32>
    %9 = arith.subf %7, %8 : vector<1x256xf32>
    %cst_4 = arith.constant 5.000000e-01 : f32
    %10 = vector.broadcast %cst_4 : f32 to vector<1x256xf32>
    %11 = arith.mulf %9, %10 : vector<1x256xf32>
    %cst_5 = arith.constant 1.000000e+00 : f32
    %12 = vector.broadcast %cst_5 : f32 to vector<1x256xf32>
    %13 = arith.addf %3, %12 : vector<1x256xf32>
    %cst_6 = arith.constant 1.600000e+01 : f32
    %14 = vector.broadcast %cst_6 : f32 to vector<1x256xf32>
    %15 = arith.mulf %13, %14 : vector<1x256xf32>
    %cst_7 = arith.constant 1.000000e+00 : f32
    %16 = vector.broadcast %cst_7 : f32 to vector<1x256xf32>
    %17 = arith.subf %15, %16 : vector<1x256xf32>
    %cst_8 = arith.constant 5.000000e-01 : f32
    %18 = vector.broadcast %cst_8 : f32 to vector<1x256xf32>
    %19 = arith.mulf %17, %18 : vector<1x256xf32>
    %20 = math.floor %11 : vector<1x256xf32>
    %21 = math.floor %19 : vector<1x256xf32>
    %22 = arith.subf %11, %20 : vector<1x256xf32>
    %cst_9 = arith.constant 1.000000e+00 : f32
    %23 = vector.broadcast %cst_9 : f32 to vector<1x256xf32>
    %24 = arith.subf %23, %22 : vector<1x256xf32>
    %25 = arith.subf %19, %21 : vector<1x256xf32>
    %cst_10 = arith.constant 1.000000e+00 : f32
    %26 = vector.broadcast %cst_10 : f32 to vector<1x256xf32>
    %27 = arith.subf %26, %25 : vector<1x256xf32>
    %28 = arith.fptosi %20 : vector<1x256xf32> to vector<1x256xi32>
    %29 = arith.fptosi %21 : vector<1x256xf32> to vector<1x256xi32>
    %c1_i32 = arith.constant 1 : i32
    %30 = vector.broadcast %c1_i32 : i32 to vector<1x256xi32>
    %31 = arith.addi %28, %30 : vector<1x256xi32>
    %c1_i32_11 = arith.constant 1 : i32
    %32 = vector.broadcast %c1_i32_11 : i32 to vector<1x256xi32>
    %33 = arith.addi %29, %32 : vector<1x256xi32>
    %34 = tpu.iota {dimensions = array<i32: 0>} : vector<16x256xi32>
    %35 = tpu.iota {dimensions = array<i32: 0>} : vector<16x256xi32>
    %36 = vector.broadcast %29 : vector<1x256xi32> to vector<16x256xi32>
    %37 = arith.cmpi eq, %34, %36 : vector<16x256xi32>
    %38 = vector.broadcast %33 : vector<1x256xi32> to vector<16x256xi32>
    %39 = arith.cmpi eq, %34, %38 : vector<16x256xi32>
    %cst_12 = arith.constant 0.000000e+00 : f32
    %40 = vector.shape_cast %25 : vector<1x256xf32> to vector<1x256xf32>
    %41 = vector.broadcast %40 : vector<1x256xf32> to vector<16x256xf32>
    %42 = vector.broadcast %cst_12 : f32 to vector<16x256xf32>
    %43 = arith.select %39, %41, %42 : vector<16x256xi1>, vector<16x256xf32>
    %44 = vector.shape_cast %27 : vector<1x256xf32> to vector<1x256xf32>
    %45 = vector.broadcast %44 : vector<1x256xf32> to vector<16x256xf32>
    %46 = arith.select %37, %45, %43 : vector<16x256xi1>, vector<16x256xf32>
    %47 = vector.broadcast %28 : vector<1x256xi32> to vector<16x256xi32>
    %48 = arith.cmpi eq, %35, %47 : vector<16x256xi32>
    %49 = vector.broadcast %31 : vector<1x256xi32> to vector<16x256xi32>
    %50 = arith.cmpi eq, %35, %49 : vector<16x256xi32>
    %cst_13 = arith.constant 0.000000e+00 : f32
    %51 = vector.shape_cast %22 : vector<1x256xf32> to vector<1x256xf32>
    %52 = vector.broadcast %51 : vector<1x256xf32> to vector<16x256xf32>
    %53 = vector.broadcast %cst_13 : f32 to vector<16x256xf32>
    %54 = arith.select %50, %52, %53 : vector<16x256xi1>, vector<16x256xf32>
    %55 = vector.shape_cast %24 : vector<1x256xf32> to vector<1x256xf32>
    %56 = vector.broadcast %55 : vector<1x256xf32> to vector<16x256xf32>
    %57 = arith.select %48, %56, %54 : vector<16x256xi1>, vector<16x256xf32>
    %58 = vector.shape_cast %46 : vector<16x256xf32> to vector<16x1x256xf32>
    %59 = vector.shape_cast %57 : vector<16x256xf32> to vector<1x16x256xf32>
    %60 = vector.broadcast %58 : vector<16x1x256xf32> to vector<16x16x256xf32>
    %61 = vector.broadcast %59 : vector<1x16x256xf32> to vector<16x16x256xf32>
    %62 = arith.mulf %60, %61 : vector<16x16x256xf32>
    %63 = vector.shape_cast %62 : vector<16x16x256xf32> to vector<256x256xf32>
    %c0_14 = arith.constant 0 : index
    %c0_15 = arith.constant 0 : index
    %c0_16 = arith.constant 0 : index
    %64 = vector.load %arg3[%c0_14, %c0_15, %c0_16] : memref<1x5x256xf32, #tpu.memory_space<vmem>>, vector<1x5x256xf32>
    %65 = vector.shape_cast %64 : vector<1x5x256xf32> to vector<5x256xf32>
    %cst_17 = arith.constant dense<0.000000e+00> : vector<5x256xf32>
    %66 = tpu.matmul %65, %63, %cst_17 {dimension_numbers = #tpu.dot_dimension_numbers<[1], [0], [0], [1], [0, 0, 1, 1], [], []>} : vector<5x256xf32>, vector<256x256xf32>, vector<5x256xf32> -> vector<5x256xf32>
    %67 = vector.extract_strided_slice %66 {offsets = [0, 0], sizes = [4, 256], strides = [1, 1]} : vector<5x256xf32> to vector<4x256xf32>
    %68 = vector.extract_strided_slice %66 {offsets = [4, 0], sizes = [1, 256], strides = [1, 1]} : vector<5x256xf32> to vector<1x256xf32>
    %c0_18 = arith.constant 0 : index
    %c0_19 = arith.constant 0 : index
    %c0_20 = arith.constant 0 : index
    %69 = vector.load %arg4[%c0_18, %c0_19, %c0_20] : memref<1x4x256xf32, #tpu.memory_space<vmem>>, vector<1x4x256xf32>
    %70 = vector.shape_cast %69 : vector<1x4x256xf32> to vector<4x256xf32>
    %71 = vector.broadcast %68 : vector<1x256xf32> to vector<4x256xf32>
    %72 = arith.mulf %71, %67 : vector<4x256xf32>
    %cst_21 = arith.constant 1.000000e+00 : f32
    %73 = vector.broadcast %cst_21 : f32 to vector<1x256xf32>
    %74 = arith.subf %73, %68 : vector<1x256xf32>
    %75 = vector.broadcast %74 : vector<1x256xf32> to vector<4x256xf32>
    %76 = arith.mulf %75, %70 : vector<4x256xf32>
    %77 = arith.addf %72, %76 : vector<4x256xf32>
    %c0_22 = arith.constant 0 : index
    %c0_23 = arith.constant 0 : index
    %c0_24 = arith.constant 0 : index
    %78 = vector.load %arg5[%c0_22, %c0_23, %c0_24] : memref<1x4x256xf32, #tpu.memory_space<vmem>>, vector<1x4x256xf32>
    %79 = vector.shape_cast %78 : vector<1x4x256xf32> to vector<4x256xf32>
    %80 = vector.shape_cast %77 : vector<4x256xf32> to vector<1x4x256xf32>
    tpu.vector_store %arg5[%c0_22, %c0_23, %c0_24], %80 {strides = array<i32>} : memref<1x4x256xf32, #tpu.memory_space<vmem>>, vector<1x4x256xf32>,
    return
  }
  func.func @transform_0(%arg0: i32, %arg1: i32) -> (i32, i32, i32) {
    %c0_i32 = arith.constant 0 : i32
    %c0_i32_0 = arith.constant 0 : i32
    return %arg0, %c0_i32, %arg1 : i32, i32, i32
  }
  func.func @transform_1(%arg0: i32, %arg1: i32) -> (i32, i32, i32) {
    %c0_i32 = arith.constant 0 : i32
    %c0_i32_0 = arith.constant 0 : i32
    %c0_i32_1 = arith.constant 0 : i32
    return %arg0, %c0_i32, %c0_i32_0 : i32, i32, i32
  }
  func.func @transform_2(%arg0: i32, %arg1: i32) -> (i32, i32, i32) {
    %c0_i32 = arith.constant 0 : i32
    %c0_i32_0 = arith.constant 0 : i32
    return %arg0, %c0_i32, %arg1 : i32, i32, i32
  }
  func.func @transform_3(%arg0: i32, %arg1: i32) -> (i32, i32, i32) {
    %c0_i32 = arith.constant 0 : i32
    %c0_i32_0 = arith.constant 0 : i32
    return %arg0, %c0_i32, %arg1 : i32, i32, i32
  }
}

</mosaic_0001>

<bundles_post_ra>
// kernel: tpu_custom_call.1
= control target key start
LH: loop header
LB: loop body
LE: loop exit
PB: predicated region body
PF: predicated region fallthrough
CT: control target
= control target key end

     0   :  { %8 = vsyncpa [#allocation3], 0  ;;  %s1508_s0 = inlined_call_operand.vmem [shape: f32[2,2,256], index: 0, kind: input, shape index: {}]   ;;  %s1509_s1 = inlined_call_operand.vmem [shape: f32[2,5,256], index: 1, kind: input, shape index: {}]   ;;  %s1510_s2 = inlined_call_operand.vmem [shape: f32[2,4,256], index: 2, kind: input, shape index: {}]   ;;  %s1511_s3 = inlined_call_operand.hbm [shape: f32[2,4,256], index: 3, kind: output, shape index: {}]  }
   0x1   :  { %10 = vsyncpa [#allocation3 + $0x1], 0  ;;  %s1177_s12 = smov 0   ;;  %s1179_s13 = smov 0  }
   0x2   :  { %s1181_s14 = smov 0   ;;  %s1183_s15 = smov 0  }
   0x3   :  { %s1185_s16 = smov 0   ;;  %s1187_s17 = smov 0  }
   0x4 LB: > { %s996_s18 = sadd.s32 4294967295, %s1153_s17   ;;  %s997_s19 = sadd.s32 4294967294, %s1153_s17   ;;  %s1153_s17 = sphi %s1187_s17, %s16_s17   ;;  %s1149_s16 = sphi %s1185_s16, %s1518_s16   ;;  %s1145_s15 = sphi %s1183_s15, %s1517_s15   ;;  %s1141_s14 = sphi %s1181_s14, %s1516_s14   ;;  %s1137_s13 = sphi %s1179_s13, %s1515_s13   ;;  %s1133_s12 = sphi %s1177_s12, %s1514_s12  }
   0x5   : > { %s28_s20 = sadd.s32 1, %s1149_s16  ;;  %s119_s21 = sadd.s32 1, %s1141_s14 }
   0x6   : > { %p30_p0 = scmp.ge.s32.totalorder %s28_s20, 2  ;;  %p129_p1 = scmp.ne.s32.totalorder %s1141_s14, %s1137_s13 }
   0x7   : > { %p130_p2 = scmp.eq.s32.totalorder %s996_s18, 1  ;;  %p135_p3 = scmp.ne.s32.totalorder %s1137_s13, %s1133_s12 }
   0x8   : > { %s1520_s20 = smov (%p30_p0, %s28_s20), 0  ;;  %p136_p5 = scmp.eq.s32.totalorder %s997_s19, 1 }
   0x9   : > { %p1217_p4 = por %p130_p2, %p129_p1  ;;  %s114_s23 = ssub.s32 %s1149_s16, %s1520_s20 }
   0xa   : > { %p1000_p6 = scmp.ge.s32.totalorder %s1153_s17, 1  ;;  %p117_p7 = scmp.eq.s32.totalorder %s114_s23, 0 }
   0xb   : > { %p1224_p8 = por %p136_p5, %p135_p3  ;;  %p188_p9 = scmp.lt.s32.totalorder %s1153_s17, 3 }
   0xc   : > { %s1230_s25 = scalar_select %p117_p7, %s1141_s14, %s119_s21  }
   0xd   : > { %p189_p10 = pnand %p1000_p6, %p188_p9 }
   0xe   : > { %p231_p11 = scmp.lt.s32.totalorder (!%p189_p10), %s1145_s15, 1  ;;  %s227_s18 = sand.u32 (!%p189_p10), 1, %s1137_s13  }
   0xf   : > { %192 = sbr.rel (%p189_p10) target bundleno = 344 (0x158), region = 32  ;;  %s1001_s19 = sshll.u32 (!%p189_p10), %s227_s18, 3 }
  0x10   : > { %s1017_s21 = sshll.u32 (!%p189_p10), %s1145_s15, 7  ;;  %s229_s23 = scalar_lea.vmem (!%p189_p10), [#allocation2], %s1001_s19 }
  0x11   : > { %s888_s29 = scalar_lea.hbm (!%p189_p10), %s1511_s3, %s1017_s21  ;;  %s874_s30 = scalar_lea.sflag (!%p189_p10), [#allocation3], %s227_s18 }
  0x12   : > { %s1156_s5 = smov (!%p189_p10), [#allocation2]  }
  0x13   : > { %s1081_s6 = sshll.u32 (!%p189_p10), %s1156_s5, 4  ;;  %s1082_s6 = int_to_ptr.vmem [resolvable:$false] %s1081_s6 }
  0x14   : > { %s1234_s26 = scalar_select %p231_p11, %s1145_s15, 1  ;;  %v266_v3 = vlaneseq  ;;  %v1155_v29 = vmov 1966171168  }
  0x15   : > { %v446_v30 = vunpack.c.l.s4 %v1155_v29  ;;  %s1083_s15 = scalar_lea.vmem %s1082_s6, 256 }
  0x16   : > { %s1014_s27 = sshll.u32 %s1234_s26, 2  ;;  %s1015_s28 = sshll.u32 %s1234_s26, 4  ;;  %v1247_v6 = vshrl.u32 %v266_v3, 7 }
  0x17   : > { %s238_s4 = scalar_lea.vmem %s1508_s0, %s1014_s27  ;;  %s1244_s7 = scalar_lea.vmem %s1509_s1, %s1015_s28  ;;  %v447_v39 = vunpack.c.0.s8 %v446_v30 }
  0x18   : > { %v256_v0 = vld [vmem:[%s238_s4] sm:$0xf]  ;;  %v768_v1 = vld [vmem:[%s1244_s7 + $0x8] sm:$0x1f]  ;;  %v1250_v9 = vsub.s32 1, %v1247_v6  ;;  %v275_v10 = vsub.s32 3, %v1247_v6 }
  0x19   : > { %v257_v2 = vadd.f32 1.0, %v256_v0  ;;  %833 = vmatprep.mubr.f32.mxu0 %v768_v1  ;;  %v1274_v28 = vsub.s32 0, %v1247_v6  ;;  %v361_v33 = vsub.s32 2, %v1247_v6  ;;  %v268_v47 = vadd.s32 8, %v1247_v6  ;;  %s1016_s8 = sshll.u32 %s1234_s26, 3  ;;  %s890_s26 = sshll.u32 %s229_s23, 4  ;;  %s891_s26 = int_to_ptr.vmem [resolvable:$true] %s890_s26 }
  0x1a   : > { %v1307_v49 = vsub.s32 %v447_v39, %v1247_v6  ;;  %s253_s11 = scalar_lea.vmem %s1510_s2, %s1016_s8  ;;  %s1077_s4 = scalar_lea.vmem %s891_s26, 128 }
  0x1b   : > { %v258_v4 = vmul.f32 16.0, %v257_v2  ;;  %p1078_p12 = scmp.ne.s32.totalorder %s891_s26, %s1077_s4  ;;  %p1084_p1 = scmp.lt.s32.totalorder %s891_s26, %s1082_s6 }
  0x1c   : > { %p1085_p2 = scmp.lt.s32.totalorder %s1083_s15, %s1077_s4 }
  0x1d   : > { %v1008_v5 = vadd.f32 -1.0, %v258_v4  ;;  %p1079_p13 = pnand %p1078_p12, %p1217_p4 }
  0x1e   : > { %p1086_p3 = por %p1085_p2, %p1084_p1 }
  0x1f   : > { %v260_v7 = vmul.f32 0.5, %v1008_v5  ;;  %p1080_p0 = pneg %p1079_p13 }
  0x21   : > { %v261_v8 = vfloor.f32 %v260_v7  ;;  %p1087_p5 = pnand %p1086_p3, %p1080_p0 }
  0x23   : > { %v262_v11 = vsub.f32 %v260_v7, %v261_v8  ;;  %v1018_v12 = vtrunc.f32 %v261_v8 }
  0x25   : > { %v1253_v13 = vsub.f32 1.0, %v262_v11  ;;  %v1019_v14 = vcvt.f32.s32 %v1018_v12  ;;  %v313_v15 = vrot.slane %v262_v11, %v1250_v9  ;;  %v317_v16 = vrot.slane %v262_v11, %v275_v10 }
  0x26   : > { %v398_v45 = vrot.slane %v262_v11, %v1274_v28  ;;  %v402_v46 = vrot.slane %v262_v11, %v361_v33 }
  0x27   : > { %v265_v17 = vadd.s32 1, %v1019_v14  ;;  %v272_v18 = vrot.slane %v1019_v14, %v1250_v9  ;;  %v276_v19 = vrot.slane %v1019_v14, %v275_v10  ;;  %v336_v20 = vrot.slane %v1253_v13, %v1250_v9 }
  0x28   : > { %v340_v21 = vrot.slane %v1253_v13, %v275_v10  ;;  %v1268_v26 = vrot.slane %v313_v15, %v1250_v9  ;;  %v1271_v27 = vrot.slane %v317_v16, %v1250_v9  ;;  %v358_v40 = vrot.slane %v1019_v14, %v1274_v28 }
  0x29   : > { %v1261_v22 = vrot.slane %v272_v18, %v1250_v9  ;;  %v1264_v23 = vrot.slane %v276_v19, %v1250_v9  ;;  %v292_v24 = vrot.slane %v265_v17, %v1250_v9  ;;  %v296_v25 = vrot.slane %v265_v17, %v275_v10 }
  0x2a   : > { %v1284_v34 = vrot.slane %v336_v20, %v1250_v9  ;;  %v1287_v35 = vrot.slane %v340_v21, %v1250_v9  ;;  %v378_v38 = vrot.slane %v265_v17, %v1274_v28  ;;  %v382_v41 = vrot.slane %v265_v17, %v361_v33 }
  0x2b   : > { %v1277_v31 = vrot.slane %v292_v24, %v1250_v9  ;;  %v1280_v32 = vrot.slane %v296_v25, %v1250_v9  ;;  %vm285_vm0 = vcmp.eq.s32.totalorder %v1247_v6, %v1261_v22  ;;  %vm286_vm1 = vcmp.eq.s32.totalorder %v1247_v6, %v1264_v23 }
  0x2c   : > { %v362_v44 = vrot.slane %v1019_v14, %v361_v33  ;;  %v386_v48 = vrot.slane %v378_v38, %v1274_v28  ;;  %v366_v50 = vrot.slane %v358_v40, %v1274_v28  ;;  %v390_v51 = vrot.slane %v382_v41, %v1274_v28 }
  0x2d   : > { %vm305_vm2 = vcmp.eq.s32.totalorder %v1247_v6, %v1277_v31  ;;  %vm306_vm3 = vcmp.eq.s32.totalorder %v1247_v6, %v1280_v32  ;;  %v408_v54 = vrot.slane %v398_v45, %v1274_v28  ;;  %v412_v55 = vrot.slane %v402_v46, %v1274_v28 }
  0x2e   : > { %v328_v36 = vsel %vm305_vm2, %v1268_v26, 0.0  ;;  %v329_v37 = vsel %vm306_vm3, %v1271_v27, 0.0  ;;  %v370_v53 = vrot.slane %v362_v44, %v1274_v28  ;;  %vm391_vm4 = vcmp.eq.s32.totalorder %v1247_v6, %v386_v48 }
  0x2f   : > { %v351_v42 = vsel %vm285_vm0, %v1284_v34, %v328_v36  ;;  %v352_v43 = vsel %vm286_vm1, %v1287_v35, %v329_v37  ;;  %v420_v56 = vrot.slane %v1253_v13, %v1274_v28  ;;  %v424_v57 = vrot.slane %v1253_v13, %v361_v33 }
  0x30   : > { %v444_v52 = vcombine.high %v351_v42, %v352_v43  ;;  %vm392_vm5 = vcmp.eq.s32.totalorder %v1247_v6, %v390_v51  ;;  %vm393_vm6 = vcmp.eq.s32.totalorder %v268_v47, %v386_v48  ;;  %v443_v58 = vcombine.low %v351_v42, %v352_v43 }
  0x31   : > { %vm371_vm7 = vcmp.eq.s32.totalorder %v1247_v6, %v366_v50  ;;  %vm372_vm8 = vcmp.eq.s32.totalorder %v1247_v6, %v370_v53  ;;  %vm373_vm9 = vcmp.eq.s32.totalorder %v268_v47, %v366_v50  ;;  %vm394_vm10 = vcmp.eq.s32.totalorder %v268_v47, %v390_v51 }
  0x32   : > { %v458_v59 = vrot.slane %v444_v52, %v1307_v49  ;;  %vm374_vm11 = vcmp.eq.s32.totalorder %v268_v47, %v370_v53  ;;  %v413_v60 = vsel %vm391_vm4, %v408_v54, 0.0  ;;  %v414_v63 = vsel %vm392_vm5, %v412_v55, 0.0 }
  0x33   : > { %v415_v0 = vsel %vm393_vm6, %v408_v54, 0.0  ;;  %v430_v1 = vrot.slane %v420_v56, %v1274_v28  ;;  %v434_v2 = vrot.slane %v424_v57, %v1274_v28  ;;  %v416_v3 = vsel %vm394_vm10, %v412_v55, 0.0 }
  0x34   : > { %v460_v61 = vcombine.high %v458_v59, %v458_v59  ;;  %v474_v62 = vrot.slane %v458_v59, %v1307_v49  ;;  %v451_v7 = vrot.slane %v443_v58, %v1307_v49  ;;  %vm307_vm12 = vcmp.eq.s32.totalorder %v268_v47, %v1277_v31 }
  0x35   : > { %vm308_vm13 = vcmp.eq.s32.totalorder %v268_v47, %v1280_v32  ;;  %v1331_v10 = vsel %vm371_vm7, %v430_v1, %v413_v60  ;;  %v1335_v11 = vsel %vm372_vm8, %v434_v2, %v414_v63  ;;  %v1338_v12 = vsel %vm373_vm9, %v430_v1, %v415_v0 }
  0x36   : > { %v488_v4 = vrot.slane %v460_v61, %v1307_v49  ;;  %v490_v5 = vcombine.high %v474_v62, %v474_v62  ;;  %v1341_v13 = vsel %vm374_vm11, %v434_v2, %v416_v3  ;;  %v459_v17 = vcombine.high %v451_v7, %v451_v7 }
  0x37   : > { %vm287_vm14 = vcmp.eq.s32.totalorder %v268_v47, %v1261_v22  ;;  %vm288_vm15 = vcmp.eq.s32.totalorder %v268_v47, %v1264_v23  ;;  %v330_v19 = vsel %vm307_vm12, %v1268_v26, 0.0  ;;  %v331_v25 = vsel %vm308_vm13, %v1271_v27, 0.0 }
  0x38   : > { %v492_v8 = vcombine.high %v488_v4, %v488_v4  ;;  %v598_v16 = vrot.slane %v490_v5, %v1250_v9  ;;  %v594_v18 = vrot.slane %v490_v5, %v1274_v28  ;;  %v590_v22 = vrot.slane %v488_v4, %v1250_v9 }
  0x39   : > { %v481_v23 = vrot.slane %v459_v17, %v1307_v49  ;;  %v586_v31 = vrot.slane %v488_v4, %v1274_v28  ;;  %v1363_v33 = vsel %vm287_vm14, %v1284_v34, %v330_v19  ;;  %v1366_v32 = vsel %vm288_vm15, %v1287_v35, %v331_v25 }
  0x3a   : > { %v606_v14 = vrot.slane %v492_v8, %v1250_v9  ;;  %v602_v15 = vrot.slane %v492_v8, %v1274_v28  ;;  %v730_v30 = vmul.f32 %v598_v16, %v1341_v13  ;;  %v729_v26 = vmul.f32 %v594_v18, %v1338_v12 }
  0x3b   : > { %v728_v27 = vmul.f32 %v598_v16, %v1335_v11  ;;  %v727_v36 = vmul.f32 %v594_v18, %v1331_v10  ;;  %v467_v37 = vrot.slane %v451_v7, %v1307_v49  ;;  %v726_v38 = vmul.f32 %v590_v22, %v1341_v13 }
  0x3c   : > { %v734_v20 = vmul.f32 %v606_v14, %v1341_v13  ;;  %v733_v21 = vmul.f32 %v602_v15, %v1338_v12  ;;  %v732_v24 = vmul.f32 %v606_v14, %v1335_v11  ;;  %v731_v29 = vmul.f32 %v602_v15, %v1331_v10 }
  0x3d   : > { %v582_v39 = vrot.slane %v474_v62, %v1250_v9  ;;  %v491_v40 = vcombine.high %v481_v23, %v481_v23  ;;  %v494_v34 = vcombine.high %v1363_v33, %v1366_v32  ;;  %v725_v35 = vmul.f32 %v586_v31, %v1338_v12 }
  0x3e   : > { %769 = vmatprep.subr.mxu0 %v734_v20  ;;  %v578_v41 = vrot.slane %v474_v62, %v1274_v28  ;;  %v724_v42 = vmul.f32 %v590_v22, %v1335_v11  ;;  %v723_v43 = vmul.f32 %v586_v31, %v1331_v10  ;;  %v489_v46 = vcombine.high %v467_v37, %v467_v37 }
  0x3f   : > { %770 = vmatpush1.msra.mxu0 %v733_v21  ;;  %v722_v44 = vmul.f32 %v582_v39, %v1341_v13  ;;  %v574_v45 = vrot.slane %v491_v40, %v1250_v9  ;;  %v508_v47 = vrot.slane %v494_v34, %v1307_v49  ;;  %v570_v50 = vrot.slane %v491_v40, %v1274_v28 }
  0x40   : > { %771 = vmatprep.subr.mxu0 %v732_v24  ;;  %v721_v48 = vmul.f32 %v578_v41, %v1338_v12  ;;  %v720_v51 = vmul.f32 %v582_v39, %v1335_v11  ;;  %v719_v52 = vmul.f32 %v578_v41, %v1331_v10  ;;  %v566_v54 = vrot.slane %v489_v46, %v1250_v9 }
  0x41   : > { %772 = vmatpush1.msra.mxu0 %v731_v29  ;;  %v718_v53 = vmul.f32 %v574_v45, %v1341_v13  ;;  %v510_v55 = vcombine.high %v508_v47, %v508_v47  ;;  %v717_v56 = vmul.f32 %v570_v50, %v1338_v12  ;;  %v562_v57 = vrot.slane %v489_v46, %v1274_v28 }
  0x42   : > { %773 = vmatprep.subr.mxu0 %v730_v30  ;;  %v716_v58 = vmul.f32 %v574_v45, %v1335_v11  ;;  %v715_v59 = vmul.f32 %v570_v50, %v1331_v10  ;;  %v714_v60 = vmul.f32 %v566_v54, %v1341_v13  ;;  %v558_v61 = vrot.slane %v481_v23, %v1250_v9 }
  0x43   : > { %774 = vmatpush1.msra.mxu0 %v729_v26  ;;  %v538_v62 = vrot.slane %v510_v55, %v1307_v49  ;;  %v713_v63 = vmul.f32 %v562_v57, %v1338_v12  ;;  %v554_v0 = vrot.slane %v481_v23, %v1274_v28  ;;  %v712_v1 = vmul.f32 %v566_v54, %v1335_v11 }
  0x44   : > { %775 = vmatprep.subr.mxu0 %v728_v27  ;;  %v711_v2 = vmul.f32 %v562_v57, %v1331_v10  ;;  %v550_v3 = vrot.slane %v467_v37, %v1250_v9  ;;  %v710_v4 = vmul.f32 %v558_v61, %v1341_v13  ;;  %v524_v7 = vrot.slane %v508_v47, %v1307_v49 }
  0x45   : > { %776 = vmatpush1.msra.mxu0 %v727_v36  ;;  %v542_v5 = vcombine.high %v538_v62, %v538_v62  ;;  %v493_v8 = vcombine.low %v1363_v33, %v1366_v32  ;;  %v709_v14 = vmul.f32 %v554_v0, %v1338_v12  ;;  %v546_v15 = vrot.slane %v467_v37, %v1274_v28 }
  0x46   : > { %777 = vmatprep.subr.mxu0 %v726_v38  ;;  %v708_v16 = vmul.f32 %v558_v61, %v1335_v11  ;;  %v707_v17 = vmul.f32 %v554_v0, %v1331_v10  ;;  %v706_v18 = vmul.f32 %v550_v3, %v1341_v13  ;;  %v540_v20 = vcombine.high %v524_v7, %v524_v7 }
  0x47   : > { %778 = vmatpush1.msra.mxu0 %v725_v35  ;;  %v670_v19 = vrot.slane %v542_v5, %v1250_v9  ;;  %v501_v21 = vrot.slane %v493_v8, %v1307_v49  ;;  %v705_v24 = vmul.f32 %v546_v15, %v1338_v12  ;;  %v666_v25 = vrot.slane %v542_v5, %v1274_v28 }
  0x48   : > { %779 = vmatprep.subr.mxu0 %v724_v42  ;;  %v704_v29 = vmul.f32 %v550_v3, %v1335_v11  ;;  %v703_v30 = vmul.f32 %v546_v15, %v1331_v10  ;;  %v662_v23 = vrot.slane %v540_v20, %v1250_v9  ;;  %v658_v33 = vrot.slane %v540_v20, %v1274_v28 }
  0x49   : > { %780 = vmatpush1.msra.mxu0 %v723_v43  ;;  %v766_v22 = vmul.f32 %v670_v19, %v1341_v13  ;;  %v509_v26 = vcombine.high %v501_v21, %v501_v21  ;;  %v765_v31 = vmul.f32 %v666_v25, %v1338_v12  ;;  %v764_v32 = vmul.f32 %v670_v19, %v1335_v11 }
  0x4a   : > { %781 = vmatprep.subr.mxu0 %v722_v44  ;;  %v763_v27 = vmul.f32 %v666_v25, %v1331_v10  ;;  %v762_v36 = vmul.f32 %v662_v23, %v1341_v13  ;;  %v654_v37 = vrot.slane %v538_v62, %v1250_v9  ;;  %v761_v39 = vmul.f32 %v658_v33, %v1338_v12 }
  0x4b   : > { %782 = vmatpush1.msra.mxu0 %v721_v48  ;;  %v531_v38 = vrot.slane %v509_v26, %v1307_v49  ;;  %v650_v40 = vrot.slane %v538_v62, %v1274_v28  ;;  %v760_v34 = vmul.f32 %v662_v23, %v1335_v11  ;;  %v759_v35 = vmul.f32 %v658_v33, %v1331_v10 }
  0x4c   : > { %783 = vmatprep.subr.mxu0 %v720_v51  ;;  %v758_v41 = vmul.f32 %v654_v37, %v1341_v13  ;;  %v646_v42 = vrot.slane %v524_v7, %v1250_v9  ;;  %v517_v44 = vrot.slane %v501_v21, %v1307_v49  ;;  %v642_v46 = vrot.slane %v524_v7, %v1274_v28 }
  0x4d   : > { %784 = vmatpush1.msra.mxu0 %v719_v52  ;;  %v541_v43 = vcombine.high %v531_v38, %v531_v38  ;;  %v757_v45 = vmul.f32 %v650_v40, %v1338_v12  ;;  %v756_v47 = vmul.f32 %v654_v37, %v1335_v11  ;;  %v755_v48 = vmul.f32 %v650_v40, %v1331_v10 }
  0x4e   : > { %785 = vmatprep.subr.mxu0 %v718_v53  ;;  %v754_v50 = vmul.f32 %v646_v42, %v1341_v13  ;;  %v539_v52 = vcombine.high %v517_v44, %v517_v44  ;;  %v753_v49 = vmul.f32 %v642_v46, %v1338_v12  ;;  %v752_v54 = vmul.f32 %v646_v42, %v1335_v11 }
  0x4f   : > { %786 = vmatpush1.msra.mxu0 %v717_v56  ;;  %v638_v51 = vrot.slane %v541_v43, %v1250_v9  ;;  %v634_v53 = vrot.slane %v541_v43, %v1274_v28  ;;  %v751_v55 = vmul.f32 %v642_v46, %v1331_v10  ;;  %v614_v5 = vrot.slane %v517_v44, %v1250_v9 }
  0x50   : > { %787 = vmatprep.subr.mxu0 %v716_v58  ;;  %v630_v57 = vrot.slane %v539_v52, %v1250_v9  ;;  %v610_v8 = vrot.slane %v517_v44, %v1274_v28 }
  0x51   : > { %788 = vmatpush1.msra.mxu0 %v715_v59  ;;  %v750_v56 = vmul.f32 %v638_v51, %v1341_v13  ;;  %v749_v58 = vmul.f32 %v634_v53, %v1338_v12  ;;  %v626_v59 = vrot.slane %v539_v52, %v1274_v28  ;;  %v747_v61 = vmul.f32 %v634_v53, %v1331_v10 }
  0x52   : > { %789 = vmatprep.subr.mxu0 %v714_v60  ;;  %v748_v60 = vmul.f32 %v638_v51, %v1335_v11  ;;  %v746_v62 = vmul.f32 %v630_v57, %v1341_v13 }
  0x53   : > { %790 = vmatpush1.msra.mxu0 %v713_v63  ;;  %v622_v63 = vrot.slane %v531_v38, %v1250_v9  ;;  %v745_v0 = vmul.f32 %v626_v59, %v1338_v12  ;;  %v743_v3 = vmul.f32 %v626_v59, %v1331_v10  ;;  %v737_v9 = vmul.f32 %v610_v8, %v1338_v12 }
  0x54   : > { %791 = vmatprep.subr.mxu0 %v712_v1  ;;  %v618_v1 = vrot.slane %v531_v38, %v1274_v28  ;;  %v735_v28 = vmul.f32 %v610_v8, %v1331_v10 }
  0x55   : > { %792 = vmatpush1.msra.mxu0 %v711_v2  ;;  %v744_v2 = vmul.f32 %v630_v57, %v1335_v11 }
  0x56   : > { %793 = vmatprep.subr.mxu0 %v710_v4  ;;  %v742_v4 = vmul.f32 %v622_v63, %v1341_v13  ;;  %v741_v7 = vmul.f32 %v618_v1, %v1338_v12  ;;  %v739_v15 = vmul.f32 %v618_v1, %v1331_v10  ;;  %v843_v12 = vsub.s32 4, %v1247_v6 }
  0x57   : > { %794 = vmatpush1.msra.mxu0 %v709_v14  ;;  %v740_v14 = vmul.f32 %v622_v63, %v1335_v11 }
  0x58   : > { %795 = vmatprep.subr.mxu0 %v708_v16  ;;  %v738_v16 = vmul.f32 %v614_v5, %v1341_v13  ;;  %v840_v13 = vld [vmem:[%s253_s11] sm:$0xff] }
  0x59   : > { %796 = vmatpush1.msra.mxu0 %v707_v17  ;;  %v736_v17 = vmul.f32 %v614_v5, %v1335_v11  ;;  %v862_v10 = vcombine.high %v840_v13, %v840_v13 }
  0x5a   : > { %797 = vmatprep.subr.mxu0 %v706_v18  ;;  %v767_v18 = vld [vmem:[%s1244_s7] sm:$0x1f] }
  0x5b   : > { %798 = vmatpush1.msra.mxu0 %v705_v24 }
  0x5c   : > { %799 = vmatprep.subr.mxu0 %v704_v29 }
  0x5d   : > { %800 = vmatpush1.msra.mxu0 %v703_v30 }
  0x5e   : > { %801 = vmatprep.subr.mxu0 %v766_v22 }
  0x5f   : > { %802 = vmatpush2.msra.mxu0 %v765_v31 }
  0x60   : > { %803 = vmatprep.subr.mxu0 %v764_v32 }
  0x61   : > { %804 = vmatpush2.msra.mxu0 %v763_v27 }
  0x62   : > { %805 = vmatprep.subr.mxu0 %v762_v36 }
  0x63   : > { %806 = vmatpush2.msra.mxu0 %v761_v39 }
  0x64   : > { %807 = vmatprep.subr.mxu0 %v760_v34 }
  0x65   : > { %808 = vmatpush2.msra.mxu0 %v759_v35 }
  0x66   : > { %809 = vmatprep.subr.mxu0 %v758_v41 }
  0x67   : > { %810 = vmatpush2.msra.mxu0 %v757_v45 }
  0x68   : > { %811 = vmatprep.subr.mxu0 %v756_v47 }
  0x69   : > { %812 = vmatpush2.msra.mxu0 %v755_v48 }
  0x6a   : > { %813 = vmatprep.subr.mxu0 %v754_v50 }
  0x6b   : > { %814 = vmatpush2.msra.mxu0 %v753_v49 }
  0x6c   : > { %815 = vmatprep.subr.mxu0 %v752_v54 }
  0x6d   : > { %816 = vmatpush2.msra.mxu0 %v751_v55 }
  0x6e   : > { %817 = vmatprep.subr.mxu0 %v750_v56 }
  0x6f   : > { %818 = vmatpush2.msra.mxu0 %v749_v58 }
  0x70   : > { %819 = vmatprep.subr.mxu0 %v748_v60 }
  0x71   : > { %820 = vmatpush2.msra.mxu0 %v747_v61 }
  0x72   : > { %821 = vmatprep.subr.mxu0 %v746_v62 }
  0x73   : > { %822 = vmatpush2.msra.mxu0 %v745_v0 }
  0x74   : > { %823 = vmatprep.subr.mxu0 %v744_v2 }
  0x75   : > { %824 = vmatpush2.msra.mxu0 %v743_v3 }
  0x76   : > { %825 = vmatprep.subr.mxu0 %v742_v4 }
  0x77   : > { %826 = vmatpush2.msra.mxu0 %v741_v7 }
  0x78   : > { %827 = vmatprep.subr.mxu0 %v740_v14 }
  0x79   : > { %828 = vmatpush2.msra.mxu0 %v739_v15 }
  0x7a   : > { %829 = vmatprep.subr.mxu0 %v738_v16 }
  0x7b   : > { %830 = vmatpush2.msra.mxu0 %v737_v9 }
  0x7c   : > { %831 = vmatprep.subr.mxu0 %v736_v17 }
  0x7d   : > { %832 = vmatpush2.msra.mxu0 %v735_v28 }
  0x7e   : > { %834 = vmatmul.mubr.f32.vlgmr.msra.gmra.mxu0 %v767_v18 }
 0x13e   : > { %v835_v11 = vpop.f32.mrf.mxu0 }
 0x13f   : > { %v851_v19 = vsub.f32 1.0, %v835_v11  ;;  %v844_v21 = vrot.slane %v835_v11, %v843_v12 }
 0x140   : > { %v837_v20 = vpop.f32.mrf.mxu0 }
 0x141   : > { %v856_v24 = vrot.slane %v851_v19, %v843_v12  ;;  %v848_v25 = vrot.slane %v837_v20, %v843_v12  ;;  %v852_v29 = vsub.f32 1.0, %v837_v20  ;;  %v849_v23 = vmul.f32 %v844_v21, %v835_v11 }
 0x143   : > { %v864_v30 = vmul.f32 %v856_v24, %v840_v13  ;;  %v860_v22 = vrot.slane %v852_v29, %v843_v12  ;;  %v850_v26 = vmul.f32 %v848_v25, %v837_v20 }
 0x145   : > { %v865_v31 = vmul.f32 %v862_v10, %v860_v22  ;;  %v866_v6 = vadd.f32 %v864_v30, %v849_v23 }
 0x147   : > { %v867_v33 = vadd.f32 %v865_v31, %v850_v26 }
 0x149   : > { %v870_v32 = vcombine.low %v866_v6, %v867_v33 }
 0x14b   : > { %872 = vst [vmem:[%s229_s23] sm:$0xff] %v870_v32 }
 0x14c   : > { %1090 = shalt.err (!%p1087_p5)
}
 0x14d   : > { %s1091_s7 = scalar_lea.hbm %s888_s29, 128  ;;  %s1095_s10 = scalar_lea.hbm %s1511_s3, 256 }
 0x14e   : > { %p1092_p6 = scmp.ne.s32.totalorder %s888_s29, %s1091_s7  ;;  %p1096_p10 = scmp.lt.s32.totalorder %s888_s29, %s1511_s3 }
 0x14f   : > { %p1097_p11 = scmp.lt.s32.totalorder %s1095_s10, %s1091_s7 }
 0x150   : > { %p1093_p7 = pnand %p1092_p6, %p1217_p4 }
 0x151   : > { %p1098_p12 = por %p1097_p11, %p1096_p10 }
 0x152   : > { %p1094_p9 = pneg %p1093_p7 }
 0x154   : > { %p1099_p13 = pnand %p1098_p12, %p1094_p9 }
 0x156   : > { %1102 = shalt.err (!%p1099_p13)
}
 0x157   : > { %1020 = dma.vmem_to_hbm [thread:$0]  (%p1217_p4), %s891_s26, 128, %s888_s29, %s874_s30  }
 0x158 PF: > { %p1026_p0 = scmp.ge.s32.totalorder %s1153_s17, 2  ;;  %s902_s19 = sand.u32 1, %s1133_s12  }
 0x159   : > { %s903_s21 = scalar_lea.sflag [#allocation3], %s902_s19 }
 0x15a   : > { %p1023_p1 = pnand %p1026_p0, %p1224_p8 }
 0x15c   : > { %p1024_p2 = pneg %p1023_p1 }
 0x15e   : > { %1128 = dma.done.wait (%p1024_p2), %s903_s21, 128  }
 0x15f   : > { %1130 = vsyncadd (%p1024_p2), %s903_s21, 4294967168  ;;  %s16_s17 = sadd.s32 1, %s1153_s17   ;;  %s1514_s12 = smov %s1137_s13 }
 0x160   : > { %p13_p3 = scmp.ge.s32.totalorder %s16_s17, 4   ;;  %s1515_s13 = smov %s1141_s14 }
 0x161   : > { %s1516_s14 = smov %s1230_s25  ;;  %s1517_s15 = smov %s1149_s16 }
 0x162   : > { %s1518_s16 = smov %s1520_s20  ;;  %15 = sbr.rel (!%p13_p3) target bundleno = 4 (0x4), region = 73 }
 0x167   :  { %908 = vsyncpa [#allocation3], 1 }
 0x168   :  { %910 = vsyncpa [#allocation3 + $0x1], 1 }

</bundles_post_ra>
